<compile_context>
chip_gen: v5e
topology: v5e:2x2
jax: 0.10.0
libtpu: 0.0.40
codegen_flags: <defaults>
</compile_context>

<pallas_src>
import functools

import jax
import jax.numpy as jnp
import numpy as np
from jax import lax
from jax.experimental import pallas as pl
from jax.experimental.pallas import tpu as pltpu

IN_FEATURES = 4      # 2 from x, 2 from y
HIDDEN = 10
LANE = 128           # lanes per vreg  (batch axis)
CHUNK = 8            # sublanes per f32 vreg (register-tile height)
NEG_BIG = -1e30      # finite "-inf" used for masked online-logsumexp


# ----------------------------------------------------------------------------- helpers
def _cdiv(a, b):
    return -(-a // b)


def _round_up(a, b):
    return _cdiv(a, b) * b


def _choose_tiling(n, tile_n):
    """Rows of 128 samples: total padded rows and rows per grid step."""
    n_rows = _round_up(max(_cdiv(n, LANE), 1), CHUNK)          # multiple of 8 sublanes
    target_rows = _round_up(max(tile_n // LANE, CHUNK), CHUNK)  # requested block size
    if n_rows >= 2 * CHUNK:
        # Guarantee >= 2 grid steps so "parallel" can split the batch across the
        # two TensorCores on v7x (no effect on single-TC v5e/v6e).
        target_rows = min(target_rows, _round_up(_cdiv(n_rows, 2), CHUNK))
    tile_rows = min(target_rows, n_rows)
    n_rows = _round_up(n_rows, tile_rows)
    return n_rows, tile_rows


def _repack(x, y, perm, n_rows):
    """Single fused pass: gather y_shuffled, go channel-major, pad, fold to
    (6, n_rows, 128) dense planes.  Each input is streamed through HBM once."""
    n = x.shape[0]
    y_shuf = jnp.take(y, perm, axis=0)
    stacked = jnp.concatenate(
        (x.astype(jnp.float32), y.astype(jnp.float32), y_shuf.astype(jnp.float32)),
        axis=1).T                                               # (6, N): x0,x1,y0,y1,ys0,ys1
    stacked = jnp.pad(stacked, ((0, 0), (0, n_rows * LANE - n)))
    return stacked.reshape(6, n_rows, LANE)


# ----------------------------------------------------------------------------- kernels
def _load_weights(w1_ref, b1_ref, w2_ref, b2_ref):
    """Hoist all 61 SMEM scalar reads out of the per-chunk loop (once per grid step)."""
    w1 = [[w1_ref[i, j] for j in range(HIDDEN)] for i in range(IN_FEATURES)]
    b1 = [b1_ref[j] for j in range(HIDDEN)]
    w2 = [w2_ref[j] for j in range(HIDDEN)]
    b2 = b2_ref[0]
    return w1, b1, w2, b2


def _two_branch_mlp(weights, x0, x1, yj0, yj1, ym0, ym1):
    """Fused joint/marginal MLP on one (CHUNK, LANE) register tile.  Pure VPU."""
    w1, b1, w2, b2 = weights
    tj = jnp.full(x0.shape, b2, jnp.float32)
    tm = jnp.full(x0.shape, b2, jnp.float32)
    # Statically unrolled over the 10 hidden units; x-part shared by both branches.
    for j in range(HIDDEN):
        xc = w1[0][j] * x0 + w1[1][j] * x1 + b1[j]
        hj = jnp.maximum(xc + w1[2][j] * yj0 + w1[3][j] * yj1, 0.0)
        hm = jnp.maximum(xc + w1[2][j] * ym0 + w1[3][j] * ym1, 0.0)
        tj = tj + w2[j] * hj
        tm = tm + w2[j] * hm
    return tj, tm


def _mine_fwd_kernel(w1_ref, b1_ref, w2_ref, b2_ref, inp_ref, out_ref):
    """out_ref[0] = T_joint plane, out_ref[1] = T_marginal plane (dense (rows,128))."""
    weights = _load_weights(w1_ref, b1_ref, w2_ref, b2_ref)
    n_chunks = inp_ref.shape[1] // CHUNK
    unroll = 2 if (n_chunks % 2 == 0) else 1

    def body(c, carry):
        r0 = pl.multiple_of(c * CHUNK, CHUNK)
        rows = pl.ds(r0, CHUNK)
        tj, tm = _two_branch_mlp(
            weights,
            inp_ref[0, rows, :], inp_ref[1, rows, :],
            inp_ref[2, rows, :], inp_ref[3, rows, :],
            inp_ref[4, rows, :], inp_ref[5, rows, :])
        out_ref[0, rows, :] = tj        # direct plane stores, no concat temporary
        out_ref[1, rows, :] = tm
        return carry

    lax.fori_loop(0, n_chunks, body, 0, unroll=unroll)


def _mine_loss_kernel(n_ref, w1_ref, b1_ref, w2_ref, b2_ref, inp_ref, out_ref):
    """Fused reduction for the lower bound: per grid step emits
       out[0] = masked sum(T_joint), out[1] = running max(T_marginal),
       out[2] = running sum exp(T_marginal - max), each as an (8,128) partial."""
    weights = _load_weights(w1_ref, b1_ref, w2_ref, b2_ref)
    tile_rows = inp_ref.shape[1]
    n_chunks = tile_rows // CHUNK
    unroll = 2 if (n_chunks % 2 == 0) else 1

    n_valid = n_ref[0]
    base_lane = (pl.program_id(0) * tile_rows) * LANE
    flat_iota = (lax.broadcasted_iota(jnp.int32, (CHUNK, LANE), 0) * LANE
                 + lax.broadcasted_iota(jnp.int32, (CHUNK, LANE), 1))

    def body(c, carry):
        sum_tj, m_acc, s_acc = carry
        r0 = pl.multiple_of(c * CHUNK, CHUNK)
        rows = pl.ds(r0, CHUNK)
        tj, tm = _two_branch_mlp(
            weights,
            inp_ref[0, rows, :], inp_ref[1, rows, :],
            inp_ref[2, rows, :], inp_ref[3, rows, :],
            inp_ref[4, rows, :], inp_ref[5, rows, :])
        # Mask padded tail columns (sample index >= n).
        valid = flat_iota < (n_valid - base_lane - c * (CHUNK * LANE))
        tm_masked = jnp.where(valid, tm, NEG_BIG)
        m_new = jnp.maximum(m_acc, tm_masked)
        s_acc = s_acc * jnp.exp(m_acc - m_new) + jnp.where(valid, jnp.exp(tm - m_new), 0.0)
        sum_tj = sum_tj + jnp.where(valid, tj, 0.0)
        return sum_tj, m_new, s_acc

    zeros = jnp.zeros((CHUNK, LANE), jnp.float32)
    init = (zeros, jnp.full((CHUNK, LANE), NEG_BIG, jnp.float32), zeros)
    sum_tj, m_acc, s_acc = lax.fori_loop(0, n_chunks, body, init, unroll=unroll)

    out_ref[0, 0] = sum_tj
    out_ref[0, 1] = m_acc
    out_ref[0, 2] = s_acc


# ----------------------------------------------------------------------------- wrappers
_SMEM_SPEC = pl.BlockSpec(memory_space=pltpu.MemorySpace.SMEM)


@functools.partial(jax.jit, static_argnames=("tile_n",))
def _mine_forward_jit(x, y, perm, w1, b1, w2, b2, *, tile_n):
    n = x.shape[0]
    n_rows, tile_rows = _choose_tiling(n, tile_n)
    inp = _repack(x, y, perm, n_rows)                     # (6, n_rows, 128)
    grid = n_rows // tile_rows

    out = pl.pallas_call(
        _mine_fwd_kernel,
        out_shape=jax.ShapeDtypeStruct((2, n_rows, LANE), jnp.float32),
        grid=(grid,),
        in_specs=[_SMEM_SPEC, _SMEM_SPEC, _SMEM_SPEC, _SMEM_SPEC,
                  pl.BlockSpec((6, tile_rows, LANE), lambda i: (0, i, 0))],
        out_specs=pl.BlockSpec((2, tile_rows, LANE), lambda i: (0, i, 0)),
        compiler_params=pltpu.CompilerParams(dimension_semantics=("parallel",)),
    )(w1, b1, w2, b2, inp)

    flat = out.reshape(2, n_rows * LANE)
    return flat[0, :n].reshape(n, 1), flat[1, :n].reshape(n, 1)


@functools.partial(jax.jit, static_argnames=("tile_n",))
def _mine_lower_bound_jit(x, y, perm, w1, b1, w2, b2, *, tile_n):
    n = x.shape[0]
    n_rows, tile_rows = _choose_tiling(n, tile_n)
    inp = _repack(x, y, perm, n_rows)
    grid = n_rows // tile_rows
    n_arr = jnp.array([n], jnp.int32)

    partials = pl.pallas_call(
        _mine_loss_kernel,
        out_shape=jax.ShapeDtypeStruct((grid, 3, CHUNK, LANE), jnp.float32),
        grid=(grid,),
        in_specs=[_SMEM_SPEC, _SMEM_SPEC, _SMEM_SPEC, _SMEM_SPEC, _SMEM_SPEC,
                  pl.BlockSpec((6, tile_rows, LANE), lambda i: (0, i, 0))],
        out_specs=pl.BlockSpec((1, 3, CHUNK, LANE), lambda i: (i, 0, 0, 0)),
        compiler_params=pltpu.CompilerParams(dimension_semantics=("parallel",)),
    )(n_arr, w1, b1, w2, b2, inp)

    sum_tj = jnp.sum(partials[:, 0])
    m = partials[:, 1]
    s = partials[:, 2]
    m_max = jnp.max(m)
    # log(sum(exp(T_marginal))) merged across blocks/lanes (numerically stable).
    lse = jnp.log(jnp.sum(s * jnp.exp(m - m_max))) + m_max
    n_f = jnp.float32(n)
    mine = sum_tj / n_f - (lse - jnp.log(n_f))            # mean(Tj) - log(mean(exp(Tm)))
    return -mine


def mine_forward(x, y, params, perm_key, tile_n=16384):
    """Reproduces MINE.forward: returns (T_joint, T_marginal) as (N, 1) arrays.
    y is row-shuffled with a deterministic permutation (torch.randperm equivalent)."""
    w1, b1, w2, b2 = params
    perm = jax.random.permutation(perm_key, x.shape[0])
    return _mine_forward_jit(x, y, perm, w1, b1, w2, b2, tile_n=tile_n)


def mine_lower_bound(x, y, params, perm_key, tile_n=16384):
    """Reproduces MINE.lower_bound via the fused-reduction kernel (no (N,1) outputs)."""
    w1, b1, w2, b2 = params
    perm = jax.random.permutation(perm_key, x.shape[0])
    return _mine_lower_bound_jit(x, y, perm, w1, b1, w2, b2, tile_n=tile_n)


# ----------------------------------------------------------------------------- params / reference
def init_params(key):
    """xavier_uniform_ weights, PyTorch-Linear default uniform biases. Weights stored (in, out)."""
    k1, k2, k3, k4 = jax.random.split(key, 4)

    def xavier(k, fan_in, fan_out):
        bound = float(np.sqrt(6.0 / (fan_in + fan_out)))
        return jax.random.uniform(k, (fan_in, fan_out), jnp.float32, -bound, bound)

    def bias(k, fan_in, fan_out):
        bound = 1.0 / float(np.sqrt(fan_in))
        return jax.random.uniform(k, (fan_out,), jnp.float32, -bound, bound)

    w1 = xavier(k1, IN_FEATURES, HIDDEN)   # (4, 10)
    b1 = bias(k2, IN_FEATURES, HIDDEN)     # (10,)
    w2 = xavier(k3, HIDDEN, 1)[:, 0]       # (10,)
    b2 = bias(k4, HIDDEN, 1)               # (1,)
    return w1, b1, w2, b2


def _reference_forward(x, y, params, perm_key):
    w1, b1, w2, b2 = params
    perm = jax.random.permutation(perm_key, x.shape[0])
    y_shuffled = y[perm]

    def T(xy):
        h = jnp.maximum(xy @ w1 + b1[None, :], 0.0)
        return h @ w2[:, None] + b2[None, :]

    return (T(jnp.concatenate((x, y), axis=1)),
            T(jnp.concatenate((x, y_shuffled), axis=1)))


def _reference_lower_bound(x, y, params, perm_key):
    tj, tm = _reference_forward(x, y, params, perm_key)
    n = tm.shape[0]
    log_mean_exp = jax.scipy.special.logsumexp(tm) - jnp.log(jnp.float32(n))
    return -(jnp.mean(tj) - log_mean_exp)


# ----------------------------------------------------------------------------- demo / checks
if __name__ == "__main__":
    key = jax.random.PRNGKey(0)
    k_params, k_x, k_y, k_perm = jax.random.split(key, 4)
    params = init_params(k_params)

    # Small demo shape consistent with the original script (rows of data.T, 2+2 features).
    N = 8
    x = jax.random.normal(k_x, (N, 2), jnp.float32)
    y = jax.random.normal(k_y, (N, 2), jnp.float32)

    t_joint, t_marg = mine_forward(x, y, params, k_perm)
    jax.block_until_ready((t_joint, t_marg))
    ref_j, ref_m = _reference_forward(x, y, params, k_perm)
    np.testing.assert_allclose(np.asarray(t_joint), np.asarray(ref_j), rtol=1e-5, atol=1e-5)
    np.testing.assert_allclose(np.asarray(t_marg), np.asarray(ref_m), rtol=1e-5, atol=1e-5)

    lb = mine_lower_bound(x, y, params, k_perm)
    jax.block_until_ready(lb)
    lb_ref = _reference_lower_bound(x, y, params, k_perm)
    np.testing.assert_allclose(np.asarray(lb), np.asarray(lb_ref), rtol=1e-4, atol=1e-4)

    # Non-aligned, multi-block batch: exercises padding mask, pipelining and the
    # >=2-step grid (v7x dual-TC split), plus the fused masked reduction.
    N2 = 3000
    k2x, k2y, k2p = jax.random.split(jax.random.PRNGKey(1), 3)
    x2 = jax.random.normal(k2x, (N2, 2), jnp.float32)
    y2 = jax.random.normal(k2y, (N2, 2), jnp.float32)
    tj2, tm2 = mine_forward(x2, y2, params, k2p, tile_n=2048)
    jax.block_until_ready((tj2, tm2))
    r2j, r2m = _reference_forward(x2, y2, params, k2p)
    np.testing.assert_allclose(np.asarray(tj2), np.asarray(r2j), rtol=1e-5, atol=1e-5)
    np.testing.assert_allclose(np.asarray(tm2), np.asarray(r2m), rtol=1e-5, atol=1e-5)

    lb2 = mine_lower_bound(x2, y2, params, k2p, tile_n=2048)
    jax.block_until_ready(lb2)
    lb2_ref = _reference_lower_bound(x2, y2, params, k2p)
    np.testing.assert_allclose(np.asarray(lb2), np.asarray(lb2_ref), rtol=1e-4, atol=1e-4)

    print("KERNEL_OK")
</pallas_src>

<mosaic_0001>
module attributes {stable_mosaic.version = 11 : i64} {
  func.func @_mine_fwd_kernel(%arg0: i32, %arg1: memref<4x10xf32, #tpu.memory_space<smem>>, %arg2: memref<10xf32, #tpu.memory_space<smem>>, %arg3: memref<10xf32, #tpu.memory_space<smem>>, %arg4: memref<1xf32, #tpu.memory_space<smem>>, %arg5: memref<6x8x128xf32, #tpu.memory_space<vmem>>, %arg6: memref<2x8x128xf32, #tpu.memory_space<vmem>>) attributes {dimension_semantics = [#tpu.dimension_semantics<parallel>], iteration_bounds = array<i64: 1>, scalar_prefetch = 0 : i64, scratch_operands = 0 : i64, tpu.core_type = #tpu.core_type<tc>, window_params = [{transform_indices = @transform_0, window_bounds = array<i64: 4, 10>}, {transform_indices = @transform_1, window_bounds = array<i64: 10>}, {transform_indices = @transform_2, window_bounds = array<i64: 10>}, {transform_indices = @transform_3, window_bounds = array<i64: 1>}, {transform_indices = @transform_4, window_bounds = array<i64: 6, 8, 128>}, {transform_indices = @transform_5, window_bounds = array<i64: 2, 8, 128>}]} {
    %c0 = arith.constant 0 : index
    %c0_0 = arith.constant 0 : index
    %0 = memref.load %arg1[%c0, %c0_0] : memref<4x10xf32, #tpu.memory_space<smem>>
    %c0_1 = arith.constant 0 : index
    %c1 = arith.constant 1 : index
    %1 = memref.load %arg1[%c0_1, %c1] : memref<4x10xf32, #tpu.memory_space<smem>>
    %c0_2 = arith.constant 0 : index
    %c2 = arith.constant 2 : index
    %2 = memref.load %arg1[%c0_2, %c2] : memref<4x10xf32, #tpu.memory_space<smem>>
    %c0_3 = arith.constant 0 : index
    %c3 = arith.constant 3 : index
    %3 = memref.load %arg1[%c0_3, %c3] : memref<4x10xf32, #tpu.memory_space<smem>>
    %c0_4 = arith.constant 0 : index
    %c4 = arith.constant 4 : index
    %4 = memref.load %arg1[%c0_4, %c4] : memref<4x10xf32, #tpu.memory_space<smem>>
    %c0_5 = arith.constant 0 : index
    %c5 = arith.constant 5 : index
    %5 = memref.load %arg1[%c0_5, %c5] : memref<4x10xf32, #tpu.memory_space<smem>>
    %c0_6 = arith.constant 0 : index
    %c6 = arith.constant 6 : index
    %6 = memref.load %arg1[%c0_6, %c6] : memref<4x10xf32, #tpu.memory_space<smem>>
    %c0_7 = arith.constant 0 : index
    %c7 = arith.constant 7 : index
    %7 = memref.load %arg1[%c0_7, %c7] : memref<4x10xf32, #tpu.memory_space<smem>>
    %c0_8 = arith.constant 0 : index
    %c8 = arith.constant 8 : index
    %8 = memref.load %arg1[%c0_8, %c8] : memref<4x10xf32, #tpu.memory_space<smem>>
    %c0_9 = arith.constant 0 : index
    %c9 = arith.constant 9 : index
    %9 = memref.load %arg1[%c0_9, %c9] : memref<4x10xf32, #tpu.memory_space<smem>>
    %c1_10 = arith.constant 1 : index
    %c0_11 = arith.constant 0 : index
    %10 = memref.load %arg1[%c1_10, %c0_11] : memref<4x10xf32, #tpu.memory_space<smem>>
    %c1_12 = arith.constant 1 : index
    %c1_13 = arith.constant 1 : index
    %11 = memref.load %arg1[%c1_12, %c1_13] : memref<4x10xf32, #tpu.memory_space<smem>>
    %c1_14 = arith.constant 1 : index
    %c2_15 = arith.constant 2 : index
    %12 = memref.load %arg1[%c1_14, %c2_15] : memref<4x10xf32, #tpu.memory_space<smem>>
    %c1_16 = arith.constant 1 : index
    %c3_17 = arith.constant 3 : index
    %13 = memref.load %arg1[%c1_16, %c3_17] : memref<4x10xf32, #tpu.memory_space<smem>>
    %c1_18 = arith.constant 1 : index
    %c4_19 = arith.constant 4 : index
    %14 = memref.load %arg1[%c1_18, %c4_19] : memref<4x10xf32, #tpu.memory_space<smem>>
    %c1_20 = arith.constant 1 : index
    %c5_21 = arith.constant 5 : index
    %15 = memref.load %arg1[%c1_20, %c5_21] : memref<4x10xf32, #tpu.memory_space<smem>>
    %c1_22 = arith.constant 1 : index
    %c6_23 = arith.constant 6 : index
    %16 = memref.load %arg1[%c1_22, %c6_23] : memref<4x10xf32, #tpu.memory_space<smem>>
    %c1_24 = arith.constant 1 : index
    %c7_25 = arith.constant 7 : index
    %17 = memref.load %arg1[%c1_24, %c7_25] : memref<4x10xf32, #tpu.memory_space<smem>>
    %c1_26 = arith.constant 1 : index
    %c8_27 = arith.constant 8 : index
    %18 = memref.load %arg1[%c1_26, %c8_27] : memref<4x10xf32, #tpu.memory_space<smem>>
    %c1_28 = arith.constant 1 : index
    %c9_29 = arith.constant 9 : index
    %19 = memref.load %arg1[%c1_28, %c9_29] : memref<4x10xf32, #tpu.memory_space<smem>>
    %c2_30 = arith.constant 2 : index
    %c0_31 = arith.constant 0 : index
    %20 = memref.load %arg1[%c2_30, %c0_31] : memref<4x10xf32, #tpu.memory_space<smem>>
    %c2_32 = arith.constant 2 : index
    %c1_33 = arith.constant 1 : index
    %21 = memref.load %arg1[%c2_32, %c1_33] : memref<4x10xf32, #tpu.memory_space<smem>>
    %c2_34 = arith.constant 2 : index
    %c2_35 = arith.constant 2 : index
    %22 = memref.load %arg1[%c2_34, %c2_35] : memref<4x10xf32, #tpu.memory_space<smem>>
    %c2_36 = arith.constant 2 : index
    %c3_37 = arith.constant 3 : index
    %23 = memref.load %arg1[%c2_36, %c3_37] : memref<4x10xf32, #tpu.memory_space<smem>>
    %c2_38 = arith.constant 2 : index
    %c4_39 = arith.constant 4 : index
    %24 = memref.load %arg1[%c2_38, %c4_39] : memref<4x10xf32, #tpu.memory_space<smem>>
    %c2_40 = arith.constant 2 : index
    %c5_41 = arith.constant 5 : index
    %25 = memref.load %arg1[%c2_40, %c5_41] : memref<4x10xf32, #tpu.memory_space<smem>>
    %c2_42 = arith.constant 2 : index
    %c6_43 = arith.constant 6 : index
    %26 = memref.load %arg1[%c2_42, %c6_43] : memref<4x10xf32, #tpu.memory_space<smem>>
    %c2_44 = arith.constant 2 : index
    %c7_45 = arith.constant 7 : index
    %27 = memref.load %arg1[%c2_44, %c7_45] : memref<4x10xf32, #tpu.memory_space<smem>>
    %c2_46 = arith.constant 2 : index
    %c8_47 = arith.constant 8 : index
    %28 = memref.load %arg1[%c2_46, %c8_47] : memref<4x10xf32, #tpu.memory_space<smem>>
    %c2_48 = arith.constant 2 : index
    %c9_49 = arith.constant 9 : index
    %29 = memref.load %arg1[%c2_48, %c9_49] : memref<4x10xf32, #tpu.memory_space<smem>>
    %c3_50 = arith.constant 3 : index
    %c0_51 = arith.constant 0 : index
    %30 = memref.load %arg1[%c3_50, %c0_51] : memref<4x10xf32, #tpu.memory_space<smem>>
    %c3_52 = arith.constant 3 : index
    %c1_53 = arith.constant 1 : index
    %31 = memref.load %arg1[%c3_52, %c1_53] : memref<4x10xf32, #tpu.memory_space<smem>>
    %c3_54 = arith.constant 3 : index
    %c2_55 = arith.constant 2 : index
    %32 = memref.load %arg1[%c3_54, %c2_55] : memref<4x10xf32, #tpu.memory_space<smem>>
    %c3_56 = arith.constant 3 : index
    %c3_57 = arith.constant 3 : index
    %33 = memref.load %arg1[%c3_56, %c3_57] : memref<4x10xf32, #tpu.memory_space<smem>>
    %c3_58 = arith.constant 3 : index
    %c4_59 = arith.constant 4 : index
    %34 = memref.load %arg1[%c3_58, %c4_59] : memref<4x10xf32, #tpu.memory_space<smem>>
    %c3_60 = arith.constant 3 : index
    %c5_61 = arith.constant 5 : index
    %35 = memref.load %arg1[%c3_60, %c5_61] : memref<4x10xf32, #tpu.memory_space<smem>>
    %c3_62 = arith.constant 3 : index
    %c6_63 = arith.constant 6 : index
    %36 = memref.load %arg1[%c3_62, %c6_63] : memref<4x10xf32, #tpu.memory_space<smem>>
    %c3_64 = arith.constant 3 : index
    %c7_65 = arith.constant 7 : index
    %37 = memref.load %arg1[%c3_64, %c7_65] : memref<4x10xf32, #tpu.memory_space<smem>>
    %c3_66 = arith.constant 3 : index
    %c8_67 = arith.constant 8 : index
    %38 = memref.load %arg1[%c3_66, %c8_67] : memref<4x10xf32, #tpu.memory_space<smem>>
    %c3_68 = arith.constant 3 : index
    %c9_69 = arith.constant 9 : index
    %39 = memref.load %arg1[%c3_68, %c9_69] : memref<4x10xf32, #tpu.memory_space<smem>>
    %c0_70 = arith.constant 0 : index
    %40 = memref.load %arg2[%c0_70] : memref<10xf32, #tpu.memory_space<smem>>
    %c1_71 = arith.constant 1 : index
    %41 = memref.load %arg2[%c1_71] : memref<10xf32, #tpu.memory_space<smem>>
    %c2_72 = arith.constant 2 : index
    %42 = memref.load %arg2[%c2_72] : memref<10xf32, #tpu.memory_space<smem>>
    %c3_73 = arith.constant 3 : index
    %43 = memref.load %arg2[%c3_73] : memref<10xf32, #tpu.memory_space<smem>>
    %c4_74 = arith.constant 4 : index
    %44 = memref.load %arg2[%c4_74] : memref<10xf32, #tpu.memory_space<smem>>
    %c5_75 = arith.constant 5 : index
    %45 = memref.load %arg2[%c5_75] : memref<10xf32, #tpu.memory_space<smem>>
    %c6_76 = arith.constant 6 : index
    %46 = memref.load %arg2[%c6_76] : memref<10xf32, #tpu.memory_space<smem>>
    %c7_77 = arith.constant 7 : index
    %47 = memref.load %arg2[%c7_77] : memref<10xf32, #tpu.memory_space<smem>>
    %c8_78 = arith.constant 8 : index
    %48 = memref.load %arg2[%c8_78] : memref<10xf32, #tpu.memory_space<smem>>
    %c9_79 = arith.constant 9 : index
    %49 = memref.load %arg2[%c9_79] : memref<10xf32, #tpu.memory_space<smem>>
    %c0_80 = arith.constant 0 : index
    %50 = memref.load %arg3[%c0_80] : memref<10xf32, #tpu.memory_space<smem>>
    %c1_81 = arith.constant 1 : index
    %51 = memref.load %arg3[%c1_81] : memref<10xf32, #tpu.memory_space<smem>>
    %c2_82 = arith.constant 2 : index
    %52 = memref.load %arg3[%c2_82] : memref<10xf32, #tpu.memory_space<smem>>
    %c3_83 = arith.constant 3 : index
    %53 = memref.load %arg3[%c3_83] : memref<10xf32, #tpu.memory_space<smem>>
    %c4_84 = arith.constant 4 : index
    %54 = memref.load %arg3[%c4_84] : memref<10xf32, #tpu.memory_space<smem>>
    %c5_85 = arith.constant 5 : index
    %55 = memref.load %arg3[%c5_85] : memref<10xf32, #tpu.memory_space<smem>>
    %c6_86 = arith.constant 6 : index
    %56 = memref.load %arg3[%c6_86] : memref<10xf32, #tpu.memory_space<smem>>
    %c7_87 = arith.constant 7 : index
    %57 = memref.load %arg3[%c7_87] : memref<10xf32, #tpu.memory_space<smem>>
    %c8_88 = arith.constant 8 : index
    %58 = memref.load %arg3[%c8_88] : memref<10xf32, #tpu.memory_space<smem>>
    %c9_89 = arith.constant 9 : index
    %59 = memref.load %arg3[%c9_89] : memref<10xf32, #tpu.memory_space<smem>>
    %c0_90 = arith.constant 0 : index
    %60 = memref.load %arg4[%c0_90] : memref<1xf32, #tpu.memory_space<smem>>
    %c0_i32 = arith.constant 0 : i32
    %c8_i32 = arith.constant 8 : i32
    %61 = arith.muli %c0_i32, %c8_i32 : i32
    %62 = tpu.assume_multiple %61, 8 : i32
    %c0_91 = arith.constant 0 : index
    %63 = arith.index_cast %62 : i32 to index
    %c0_92 = arith.constant 0 : index
    %64 = vector.load %arg5[%c0_91, %63, %c0_92] : memref<6x8x128xf32, #tpu.memory_space<vmem>>, vector<1x8x128xf32>
    %65 = vector.shape_cast %64 : vector<1x8x128xf32> to vector<8x128xf32>
    %c1_93 = arith.constant 1 : index
    %66 = arith.index_cast %62 : i32 to index
    %c0_94 = arith.constant 0 : index
    %67 = vector.load %arg5[%c1_93, %66, %c0_94] : memref<6x8x128xf32, #tpu.memory_space<vmem>>, vector<1x8x128xf32>
    %68 = vector.shape_cast %67 : vector<1x8x128xf32> to vector<8x128xf32>
    %c2_95 = arith.constant 2 : index
    %69 = arith.index_cast %62 : i32 to index
    %c0_96 = arith.constant 0 : index
    %70 = vector.load %arg5[%c2_95, %69, %c0_96] : memref<6x8x128xf32, #tpu.memory_space<vmem>>, vector<1x8x128xf32>
    %71 = vector.shape_cast %70 : vector<1x8x128xf32> to vector<8x128xf32>
    %c3_97 = arith.constant 3 : index
    %72 = arith.index_cast %62 : i32 to index
    %c0_98 = arith.constant 0 : index
    %73 = vector.load %arg5[%c3_97, %72, %c0_98] : memref<6x8x128xf32, #tpu.memory_space<vmem>>, vector<1x8x128xf32>
    %74 = vector.shape_cast %73 : vector<1x8x128xf32> to vector<8x128xf32>
    %c4_99 = arith.constant 4 : index
    %75 = arith.index_cast %62 : i32 to index
    %c0_100 = arith.constant 0 : index
    %76 = vector.load %arg5[%c4_99, %75, %c0_100] : memref<6x8x128xf32, #tpu.memory_space<vmem>>, vector<1x8x128xf32>
    %77 = vector.shape_cast %76 : vector<1x8x128xf32> to vector<8x128xf32>
    %c5_101 = arith.constant 5 : index
    %78 = arith.index_cast %62 : i32 to index
    %c0_102 = arith.constant 0 : index
    %79 = vector.load %arg5[%c5_101, %78, %c0_102] : memref<6x8x128xf32, #tpu.memory_space<vmem>>, vector<1x8x128xf32>
    %80 = vector.shape_cast %79 : vector<1x8x128xf32> to vector<8x128xf32>
    %81 = vector.broadcast %60 : f32 to vector<8x128xf32>
    %82 = vector.broadcast %60 : f32 to vector<8x128xf32>
    %83 = vector.broadcast %0 : f32 to vector<8x128xf32>
    %84 = arith.mulf %83, %65 : vector<8x128xf32>
    %85 = vector.broadcast %10 : f32 to vector<8x128xf32>
    %86 = arith.mulf %85, %68 : vector<8x128xf32>
    %87 = arith.addf %84, %86 : vector<8x128xf32>
    %88 = vector.broadcast %40 : f32 to vector<8x128xf32>
    %89 = arith.addf %87, %88 : vector<8x128xf32>
    %90 = vector.broadcast %20 : f32 to vector<8x128xf32>
    %91 = arith.mulf %90, %71 : vector<8x128xf32>
    %92 = arith.addf %89, %91 : vector<8x128xf32>
    %93 = vector.broadcast %30 : f32 to vector<8x128xf32>
    %94 = arith.mulf %93, %74 : vector<8x128xf32>
    %95 = arith.addf %92, %94 : vector<8x128xf32>
    %cst = arith.constant 0.000000e+00 : f32
    %96 = vector.broadcast %cst : f32 to vector<8x128xf32>
    %97 = arith.maximumf %95, %96 : vector<8x128xf32>
    %98 = vector.broadcast %20 : f32 to vector<8x128xf32>
    %99 = arith.mulf %98, %77 : vector<8x128xf32>
    %100 = arith.addf %89, %99 : vector<8x128xf32>
    %101 = vector.broadcast %30 : f32 to vector<8x128xf32>
    %102 = arith.mulf %101, %80 : vector<8x128xf32>
    %103 = arith.addf %100, %102 : vector<8x128xf32>
    %cst_103 = arith.constant 0.000000e+00 : f32
    %104 = vector.broadcast %cst_103 : f32 to vector<8x128xf32>
    %105 = arith.maximumf %103, %104 : vector<8x128xf32>
    %106 = vector.broadcast %50 : f32 to vector<8x128xf32>
    %107 = arith.mulf %106, %97 : vector<8x128xf32>
    %108 = arith.addf %81, %107 : vector<8x128xf32>
    %109 = vector.broadcast %50 : f32 to vector<8x128xf32>
    %110 = arith.mulf %109, %105 : vector<8x128xf32>
    %111 = arith.addf %82, %110 : vector<8x128xf32>
    %112 = vector.broadcast %1 : f32 to vector<8x128xf32>
    %113 = arith.mulf %112, %65 : vector<8x128xf32>
    %114 = vector.broadcast %11 : f32 to vector<8x128xf32>
    %115 = arith.mulf %114, %68 : vector<8x128xf32>
    %116 = arith.addf %113, %115 : vector<8x128xf32>
    %117 = vector.broadcast %41 : f32 to vector<8x128xf32>
    %118 = arith.addf %116, %117 : vector<8x128xf32>
    %119 = vector.broadcast %21 : f32 to vector<8x128xf32>
    %120 = arith.mulf %119, %71 : vector<8x128xf32>
    %121 = arith.addf %118, %120 : vector<8x128xf32>
    %122 = vector.broadcast %31 : f32 to vector<8x128xf32>
    %123 = arith.mulf %122, %74 : vector<8x128xf32>
    %124 = arith.addf %121, %123 : vector<8x128xf32>
    %cst_104 = arith.constant 0.000000e+00 : f32
    %125 = vector.broadcast %cst_104 : f32 to vector<8x128xf32>
    %126 = arith.maximumf %124, %125 : vector<8x128xf32>
    %127 = vector.broadcast %21 : f32 to vector<8x128xf32>
    %128 = arith.mulf %127, %77 : vector<8x128xf32>
    %129 = arith.addf %118, %128 : vector<8x128xf32>
    %130 = vector.broadcast %31 : f32 to vector<8x128xf32>
    %131 = arith.mulf %130, %80 : vector<8x128xf32>
    %132 = arith.addf %129, %131 : vector<8x128xf32>
    %cst_105 = arith.constant 0.000000e+00 : f32
    %133 = vector.broadcast %cst_105 : f32 to vector<8x128xf32>
    %134 = arith.maximumf %132, %133 : vector<8x128xf32>
    %135 = vector.broadcast %51 : f32 to vector<8x128xf32>
    %136 = arith.mulf %135, %126 : vector<8x128xf32>
    %137 = arith.addf %108, %136 : vector<8x128xf32>
    %138 = vector.broadcast %51 : f32 to vector<8x128xf32>
    %139 = arith.mulf %138, %134 : vector<8x128xf32>
    %140 = arith.addf %111, %139 : vector<8x128xf32>
    %141 = vector.broadcast %2 : f32 to vector<8x128xf32>
    %142 = arith.mulf %141, %65 : vector<8x128xf32>
    %143 = vector.broadcast %12 : f32 to vector<8x128xf32>
    %144 = arith.mulf %143, %68 : vector<8x128xf32>
    %145 = arith.addf %142, %144 : vector<8x128xf32>
    %146 = vector.broadcast %42 : f32 to vector<8x128xf32>
    %147 = arith.addf %145, %146 : vector<8x128xf32>
    %148 = vector.broadcast %22 : f32 to vector<8x128xf32>
    %149 = arith.mulf %148, %71 : vector<8x128xf32>
    %150 = arith.addf %147, %149 : vector<8x128xf32>
    %151 = vector.broadcast %32 : f32 to vector<8x128xf32>
    %152 = arith.mulf %151, %74 : vector<8x128xf32>
    %153 = arith.addf %150, %152 : vector<8x128xf32>
    %cst_106 = arith.constant 0.000000e+00 : f32
    %154 = vector.broadcast %cst_106 : f32 to vector<8x128xf32>
    %155 = arith.maximumf %153, %154 : vector<8x128xf32>
    %156 = vector.broadcast %22 : f32 to vector<8x128xf32>
    %157 = arith.mulf %156, %77 : vector<8x128xf32>
    %158 = arith.addf %147, %157 : vector<8x128xf32>
    %159 = vector.broadcast %32 : f32 to vector<8x128xf32>
    %160 = arith.mulf %159, %80 : vector<8x128xf32>
    %161 = arith.addf %158, %160 : vector<8x128xf32>
    %cst_107 = arith.constant 0.000000e+00 : f32
    %162 = vector.broadcast %cst_107 : f32 to vector<8x128xf32>
    %163 = arith.maximumf %161, %162 : vector<8x128xf32>
    %164 = vector.broadcast %52 : f32 to vector<8x128xf32>
    %165 = arith.mulf %164, %155 : vector<8x128xf32>
    %166 = arith.addf %137, %165 : vector<8x128xf32>
    %167 = vector.broadcast %52 : f32 to vector<8x128xf32>
    %168 = arith.mulf %167, %163 : vector<8x128xf32>
    %169 = arith.addf %140, %168 : vector<8x128xf32>
    %170 = vector.broadcast %3 : f32 to vector<8x128xf32>
    %171 = arith.mulf %170, %65 : vector<8x128xf32>
    %172 = vector.broadcast %13 : f32 to vector<8x128xf32>
    %173 = arith.mulf %172, %68 : vector<8x128xf32>
    %174 = arith.addf %171, %173 : vector<8x128xf32>
    %175 = vector.broadcast %43 : f32 to vector<8x128xf32>
    %176 = arith.addf %174, %175 : vector<8x128xf32>
    %177 = vector.broadcast %23 : f32 to vector<8x128xf32>
    %178 = arith.mulf %177, %71 : vector<8x128xf32>
    %179 = arith.addf %176, %178 : vector<8x128xf32>
    %180 = vector.broadcast %33 : f32 to vector<8x128xf32>
    %181 = arith.mulf %180, %74 : vector<8x128xf32>
    %182 = arith.addf %179, %181 : vector<8x128xf32>
    %cst_108 = arith.constant 0.000000e+00 : f32
    %183 = vector.broadcast %cst_108 : f32 to vector<8x128xf32>
    %184 = arith.maximumf %182, %183 : vector<8x128xf32>
    %185 = vector.broadcast %23 : f32 to vector<8x128xf32>
    %186 = arith.mulf %185, %77 : vector<8x128xf32>
    %187 = arith.addf %176, %186 : vector<8x128xf32>
    %188 = vector.broadcast %33 : f32 to vector<8x128xf32>
    %189 = arith.mulf %188, %80 : vector<8x128xf32>
    %190 = arith.addf %187, %189 : vector<8x128xf32>
    %cst_109 = arith.constant 0.000000e+00 : f32
    %191 = vector.broadcast %cst_109 : f32 to vector<8x128xf32>
    %192 = arith.maximumf %190, %191 : vector<8x128xf32>
    %193 = vector.broadcast %53 : f32 to vector<8x128xf32>
    %194 = arith.mulf %193, %184 : vector<8x128xf32>
    %195 = arith.addf %166, %194 : vector<8x128xf32>
    %196 = vector.broadcast %53 : f32 to vector<8x128xf32>
    %197 = arith.mulf %196, %192 : vector<8x128xf32>
    %198 = arith.addf %169, %197 : vector<8x128xf32>
    %199 = vector.broadcast %4 : f32 to vector<8x128xf32>
    %200 = arith.mulf %199, %65 : vector<8x128xf32>
    %201 = vector.broadcast %14 : f32 to vector<8x128xf32>
    %202 = arith.mulf %201, %68 : vector<8x128xf32>
    %203 = arith.addf %200, %202 : vector<8x128xf32>
    %204 = vector.broadcast %44 : f32 to vector<8x128xf32>
    %205 = arith.addf %203, %204 : vector<8x128xf32>
    %206 = vector.broadcast %24 : f32 to vector<8x128xf32>
    %207 = arith.mulf %206, %71 : vector<8x128xf32>
    %208 = arith.addf %205, %207 : vector<8x128xf32>
    %209 = vector.broadcast %34 : f32 to vector<8x128xf32>
    %210 = arith.mulf %209, %74 : vector<8x128xf32>
    %211 = arith.addf %208, %210 : vector<8x128xf32>
    %cst_110 = arith.constant 0.000000e+00 : f32
    %212 = vector.broadcast %cst_110 : f32 to vector<8x128xf32>
    %213 = arith.maximumf %211, %212 : vector<8x128xf32>
    %214 = vector.broadcast %24 : f32 to vector<8x128xf32>
    %215 = arith.mulf %214, %77 : vector<8x128xf32>
    %216 = arith.addf %205, %215 : vector<8x128xf32>
    %217 = vector.broadcast %34 : f32 to vector<8x128xf32>
    %218 = arith.mulf %217, %80 : vector<8x128xf32>
    %219 = arith.addf %216, %218 : vector<8x128xf32>
    %cst_111 = arith.constant 0.000000e+00 : f32
    %220 = vector.broadcast %cst_111 : f32 to vector<8x128xf32>
    %221 = arith.maximumf %219, %220 : vector<8x128xf32>
    %222 = vector.broadcast %54 : f32 to vector<8x128xf32>
    %223 = arith.mulf %222, %213 : vector<8x128xf32>
    %224 = arith.addf %195, %223 : vector<8x128xf32>
    %225 = vector.broadcast %54 : f32 to vector<8x128xf32>
    %226 = arith.mulf %225, %221 : vector<8x128xf32>
    %227 = arith.addf %198, %226 : vector<8x128xf32>
    %228 = vector.broadcast %5 : f32 to vector<8x128xf32>
    %229 = arith.mulf %228, %65 : vector<8x128xf32>
    %230 = vector.broadcast %15 : f32 to vector<8x128xf32>
    %231 = arith.mulf %230, %68 : vector<8x128xf32>
    %232 = arith.addf %229, %231 : vector<8x128xf32>
    %233 = vector.broadcast %45 : f32 to vector<8x128xf32>
    %234 = arith.addf %232, %233 : vector<8x128xf32>
    %235 = vector.broadcast %25 : f32 to vector<8x128xf32>
    %236 = arith.mulf %235, %71 : vector<8x128xf32>
    %237 = arith.addf %234, %236 : vector<8x128xf32>
    %238 = vector.broadcast %35 : f32 to vector<8x128xf32>
    %239 = arith.mulf %238, %74 : vector<8x128xf32>
    %240 = arith.addf %237, %239 : vector<8x128xf32>
    %cst_112 = arith.constant 0.000000e+00 : f32
    %241 = vector.broadcast %cst_112 : f32 to vector<8x128xf32>
    %242 = arith.maximumf %240, %241 : vector<8x128xf32>
    %243 = vector.broadcast %25 : f32 to vector<8x128xf32>
    %244 = arith.mulf %243, %77 : vector<8x128xf32>
    %245 = arith.addf %234, %244 : vector<8x128xf32>
    %246 = vector.broadcast %35 : f32 to vector<8x128xf32>
    %247 = arith.mulf %246, %80 : vector<8x128xf32>
    %248 = arith.addf %245, %247 : vector<8x128xf32>
    %cst_113 = arith.constant 0.000000e+00 : f32
    %249 = vector.broadcast %cst_113 : f32 to vector<8x128xf32>
    %250 = arith.maximumf %248, %249 : vector<8x128xf32>
    %251 = vector.broadcast %55 : f32 to vector<8x128xf32>
    %252 = arith.mulf %251, %242 : vector<8x128xf32>
    %253 = arith.addf %224, %252 : vector<8x128xf32>
    %254 = vector.broadcast %55 : f32 to vector<8x128xf32>
    %255 = arith.mulf %254, %250 : vector<8x128xf32>
    %256 = arith.addf %227, %255 : vector<8x128xf32>
    %257 = vector.broadcast %6 : f32 to vector<8x128xf32>
    %258 = arith.mulf %257, %65 : vector<8x128xf32>
    %259 = vector.broadcast %16 : f32 to vector<8x128xf32>
    %260 = arith.mulf %259, %68 : vector<8x128xf32>
    %261 = arith.addf %258, %260 : vector<8x128xf32>
    %262 = vector.broadcast %46 : f32 to vector<8x128xf32>
    %263 = arith.addf %261, %262 : vector<8x128xf32>
    %264 = vector.broadcast %26 : f32 to vector<8x128xf32>
    %265 = arith.mulf %264, %71 : vector<8x128xf32>
    %266 = arith.addf %263, %265 : vector<8x128xf32>
    %267 = vector.broadcast %36 : f32 to vector<8x128xf32>
    %268 = arith.mulf %267, %74 : vector<8x128xf32>
    %269 = arith.addf %266, %268 : vector<8x128xf32>
    %cst_114 = arith.constant 0.000000e+00 : f32
    %270 = vector.broadcast %cst_114 : f32 to vector<8x128xf32>
    %271 = arith.maximumf %269, %270 : vector<8x128xf32>
    %272 = vector.broadcast %26 : f32 to vector<8x128xf32>
    %273 = arith.mulf %272, %77 : vector<8x128xf32>
    %274 = arith.addf %263, %273 : vector<8x128xf32>
    %275 = vector.broadcast %36 : f32 to vector<8x128xf32>
    %276 = arith.mulf %275, %80 : vector<8x128xf32>
    %277 = arith.addf %274, %276 : vector<8x128xf32>
    %cst_115 = arith.constant 0.000000e+00 : f32
    %278 = vector.broadcast %cst_115 : f32 to vector<8x128xf32>
    %279 = arith.maximumf %277, %278 : vector<8x128xf32>
    %280 = vector.broadcast %56 : f32 to vector<8x128xf32>
    %281 = arith.mulf %280, %271 : vector<8x128xf32>
    %282 = arith.addf %253, %281 : vector<8x128xf32>
    %283 = vector.broadcast %56 : f32 to vector<8x128xf32>
    %284 = arith.mulf %283, %279 : vector<8x128xf32>
    %285 = arith.addf %256, %284 : vector<8x128xf32>
    %286 = vector.broadcast %7 : f32 to vector<8x128xf32>
    %287 = arith.mulf %286, %65 : vector<8x128xf32>
    %288 = vector.broadcast %17 : f32 to vector<8x128xf32>
    %289 = arith.mulf %288, %68 : vector<8x128xf32>
    %290 = arith.addf %287, %289 : vector<8x128xf32>
    %291 = vector.broadcast %47 : f32 to vector<8x128xf32>
    %292 = arith.addf %290, %291 : vector<8x128xf32>
    %293 = vector.broadcast %27 : f32 to vector<8x128xf32>
    %294 = arith.mulf %293, %71 : vector<8x128xf32>
    %295 = arith.addf %292, %294 : vector<8x128xf32>
    %296 = vector.broadcast %37 : f32 to vector<8x128xf32>
    %297 = arith.mulf %296, %74 : vector<8x128xf32>
    %298 = arith.addf %295, %297 : vector<8x128xf32>
    %cst_116 = arith.constant 0.000000e+00 : f32
    %299 = vector.broadcast %cst_116 : f32 to vector<8x128xf32>
    %300 = arith.maximumf %298, %299 : vector<8x128xf32>
    %301 = vector.broadcast %27 : f32 to vector<8x128xf32>
    %302 = arith.mulf %301, %77 : vector<8x128xf32>
    %303 = arith.addf %292, %302 : vector<8x128xf32>
    %304 = vector.broadcast %37 : f32 to vector<8x128xf32>
    %305 = arith.mulf %304, %80 : vector<8x128xf32>
    %306 = arith.addf %303, %305 : vector<8x128xf32>
    %cst_117 = arith.constant 0.000000e+00 : f32
    %307 = vector.broadcast %cst_117 : f32 to vector<8x128xf32>
    %308 = arith.maximumf %306, %307 : vector<8x128xf32>
    %309 = vector.broadcast %57 : f32 to vector<8x128xf32>
    %310 = arith.mulf %309, %300 : vector<8x128xf32>
    %311 = arith.addf %282, %310 : vector<8x128xf32>
    %312 = vector.broadcast %57 : f32 to vector<8x128xf32>
    %313 = arith.mulf %312, %308 : vector<8x128xf32>
    %314 = arith.addf %285, %313 : vector<8x128xf32>
    %315 = vector.broadcast %8 : f32 to vector<8x128xf32>
    %316 = arith.mulf %315, %65 : vector<8x128xf32>
    %317 = vector.broadcast %18 : f32 to vector<8x128xf32>
    %318 = arith.mulf %317, %68 : vector<8x128xf32>
    %319 = arith.addf %316, %318 : vector<8x128xf32>
    %320 = vector.broadcast %48 : f32 to vector<8x128xf32>
    %321 = arith.addf %319, %320 : vector<8x128xf32>
    %322 = vector.broadcast %28 : f32 to vector<8x128xf32>
    %323 = arith.mulf %322, %71 : vector<8x128xf32>
    %324 = arith.addf %321, %323 : vector<8x128xf32>
    %325 = vector.broadcast %38 : f32 to vector<8x128xf32>
    %326 = arith.mulf %325, %74 : vector<8x128xf32>
    %327 = arith.addf %324, %326 : vector<8x128xf32>
    %cst_118 = arith.constant 0.000000e+00 : f32
    %328 = vector.broadcast %cst_118 : f32 to vector<8x128xf32>
    %329 = arith.maximumf %327, %328 : vector<8x128xf32>
    %330 = vector.broadcast %28 : f32 to vector<8x128xf32>
    %331 = arith.mulf %330, %77 : vector<8x128xf32>
    %332 = arith.addf %321, %331 : vector<8x128xf32>
    %333 = vector.broadcast %38 : f32 to vector<8x128xf32>
    %334 = arith.mulf %333, %80 : vector<8x128xf32>
    %335 = arith.addf %332, %334 : vector<8x128xf32>
    %cst_119 = arith.constant 0.000000e+00 : f32
    %336 = vector.broadcast %cst_119 : f32 to vector<8x128xf32>
    %337 = arith.maximumf %335, %336 : vector<8x128xf32>
    %338 = vector.broadcast %58 : f32 to vector<8x128xf32>
    %339 = arith.mulf %338, %329 : vector<8x128xf32>
    %340 = arith.addf %311, %339 : vector<8x128xf32>
    %341 = vector.broadcast %58 : f32 to vector<8x128xf32>
    %342 = arith.mulf %341, %337 : vector<8x128xf32>
    %343 = arith.addf %314, %342 : vector<8x128xf32>
    %344 = vector.broadcast %9 : f32 to vector<8x128xf32>
    %345 = arith.mulf %344, %65 : vector<8x128xf32>
    %346 = vector.broadcast %19 : f32 to vector<8x128xf32>
    %347 = arith.mulf %346, %68 : vector<8x128xf32>
    %348 = arith.addf %345, %347 : vector<8x128xf32>
    %349 = vector.broadcast %49 : f32 to vector<8x128xf32>
    %350 = arith.addf %348, %349 : vector<8x128xf32>
    %351 = vector.broadcast %29 : f32 to vector<8x128xf32>
    %352 = arith.mulf %351, %71 : vector<8x128xf32>
    %353 = arith.addf %350, %352 : vector<8x128xf32>
    %354 = vector.broadcast %39 : f32 to vector<8x128xf32>
    %355 = arith.mulf %354, %74 : vector<8x128xf32>
    %356 = arith.addf %353, %355 : vector<8x128xf32>
    %cst_120 = arith.constant 0.000000e+00 : f32
    %357 = vector.broadcast %cst_120 : f32 to vector<8x128xf32>
    %358 = arith.maximumf %356, %357 : vector<8x128xf32>
    %359 = vector.broadcast %29 : f32 to vector<8x128xf32>
    %360 = arith.mulf %359, %77 : vector<8x128xf32>
    %361 = arith.addf %350, %360 : vector<8x128xf32>
    %362 = vector.broadcast %39 : f32 to vector<8x128xf32>
    %363 = arith.mulf %362, %80 : vector<8x128xf32>
    %364 = arith.addf %361, %363 : vector<8x128xf32>
    %cst_121 = arith.constant 0.000000e+00 : f32
    %365 = vector.broadcast %cst_121 : f32 to vector<8x128xf32>
    %366 = arith.maximumf %364, %365 : vector<8x128xf32>
    %367 = vector.broadcast %59 : f32 to vector<8x128xf32>
    %368 = arith.mulf %367, %358 : vector<8x128xf32>
    %369 = arith.addf %340, %368 : vector<8x128xf32>
    %370 = vector.broadcast %59 : f32 to vector<8x128xf32>
    %371 = arith.mulf %370, %366 : vector<8x128xf32>
    %372 = arith.addf %343, %371 : vector<8x128xf32>
    %c0_122 = arith.constant 0 : index
    %373 = arith.index_cast %62 : i32 to index
    %c0_123 = arith.constant 0 : index
    %374 = vector.load %arg6[%c0_122, %373, %c0_123] : memref<2x8x128xf32, #tpu.memory_space<vmem>>, vector<1x8x128xf32>
    %375 = vector.shape_cast %374 : vector<1x8x128xf32> to vector<8x128xf32>
    %376 = vector.shape_cast %369 : vector<8x128xf32> to vector<1x8x128xf32>
    tpu.vector_store %arg6[%c0_122, %373, %c0_123], %376 {strides = array<i32>} : memref<2x8x128xf32, #tpu.memory_space<vmem>>, vector<1x8x128xf32>,
    %c1_124 = arith.constant 1 : index
    %377 = arith.index_cast %62 : i32 to index
    %c0_125 = arith.constant 0 : index
    %378 = vector.load %arg6[%c1_124, %377, %c0_125] : memref<2x8x128xf32, #tpu.memory_space<vmem>>, vector<1x8x128xf32>
    %379 = vector.shape_cast %378 : vector<1x8x128xf32> to vector<8x128xf32>
    %380 = vector.shape_cast %372 : vector<8x128xf32> to vector<1x8x128xf32>
    tpu.vector_store %arg6[%c1_124, %377, %c0_125], %380 {strides = array<i32>} : memref<2x8x128xf32, #tpu.memory_space<vmem>>, vector<1x8x128xf32>,
    %c1_i32 = arith.constant 1 : i32
    return
  }
  func.func @transform_0(%arg0: i32) -> (i32, i32) {
    %c0_i32 = arith.constant 0 : i32
    %c0_i32_0 = arith.constant 0 : i32
    %c0_i32_1 = arith.constant 0 : i32
    return %c0_i32, %c0_i32_0 : i32, i32
  }
  func.func @transform_1(%arg0: i32) -> i32 {
    %c0_i32 = arith.constant 0 : i32
    %c0_i32_0 = arith.constant 0 : i32
    return %c0_i32 : i32
  }
  func.func @transform_2(%arg0: i32) -> i32 {
    %c0_i32 = arith.constant 0 : i32
    %c0_i32_0 = arith.constant 0 : i32
    return %c0_i32 : i32
  }
  func.func @transform_3(%arg0: i32) -> i32 {
    %c0_i32 = arith.constant 0 : i32
    %c0_i32_0 = arith.constant 0 : i32
    return %c0_i32 : i32
  }
  func.func @transform_4(%arg0: i32) -> (i32, i32, i32) {
    %c0_i32 = arith.constant 0 : i32
    %c0_i32_0 = arith.constant 0 : i32
    %c0_i32_1 = arith.constant 0 : i32
    return %c0_i32, %arg0, %c0_i32_0 : i32, i32, i32
  }
  func.func @transform_5(%arg0: i32) -> (i32, i32, i32) {
    %c0_i32 = arith.constant 0 : i32
    %c0_i32_0 = arith.constant 0 : i32
    %c0_i32_1 = arith.constant 0 : i32
    return %c0_i32, %arg0, %c0_i32_0 : i32, i32, i32
  }
}

</mosaic_0001>

<bundles_post_ra>
// kernel: _mine_forward_jit.1
= control target key start
LH: loop header
LB: loop body
LE: loop exit
PB: predicated region body
PF: predicated region fallthrough
CT: control target
= control target key end

     0   :  { %11 = vsyncpa [#allocation4], 0  ;;  %s935_s0 = inlined_call_operand.vmem [shape: f32[4,10], index: 0, kind: input, shape index: {}]   ;;  %s936_s1 = inlined_call_operand.vmem [shape: f32[10], index: 1, kind: input, shape index: {}]   ;;  %s937_s2 = inlined_call_operand.vmem [shape: f32[10], index: 2, kind: input, shape index: {}]   ;;  %s938_s3 = inlined_call_operand.<no memory space> [shape: f32[1], index: 3, kind: input, shape index: {}]   ;;  %s939_s4 = inlined_call_operand.vmem [shape: f32[6,8,128], index: 4, kind: input, shape index: {}]   ;;  %s940_s5 = inlined_call_operand.vmem [shape: f32[2,8,128], index: 5, kind: output, shape index: {}]  }
   0x1   :  { %12 = vsyncpa [#allocation6], 0  ;;  %s27_s20 = sshll.u32 %s936_s1, 4  ;;  %s18_s23 = sshll.u32 %s935_s0, 4  ;;  %s28_s20 = int_to_ptr.vmem [resolvable:$true] %s27_s20  ;;  %s19_s23 = int_to_ptr.vmem [resolvable:$true] %s18_s23 }
   0x2   :  { %s496_s24 = smov [#allocation5]   ;;  %s497_s25 = smov [#allocation3]  }
   0x3   :  { %30 = dma.vmem_to_smem %s28_s20, 16, %s496_s24, [#allocation6]  }
   0x4   :  { %21 = dma.vmem_to_smem %s19_s23, 64, %s497_s25, [#allocation4]  }
   0x5   :  { %s36_s28 = sshll.u32 %s937_s2, 4  ;;  %s498_s29 = smov [#allocation7]   ;;  %s37_s28 = int_to_ptr.vmem [resolvable:$true] %s36_s28 }
   0x6   :  { %39 = dma.vmem_to_smem %s37_s28, 16, %s498_s29, [#allocation6]  }
   0x7   :  { %492 = dma.done.wait [#allocation4], 64  }
   0x8   :  { %493 = vsyncadd [#allocation4], 4294967232 }
   0x9   :  { %494 = dma.done.wait [#allocation6], 32  }
   0xa   :  { %495 = vsyncadd [#allocation6], 4294967264 }
   0xb   :  { %56 = sfence }
   0xc   :  { %s538_s1 = sld [smem:[#allocation3]]  ;;  %v577_v0 = vld [vmem:[%s939_s4] sm:$0xff]  ;;  %v582_v1 = vld [vmem:[%s939_s4 + $0x8] sm:$0xff]  ;;  %v627_v28 = vld [vmem:[%s939_s4 + $0x10] sm:$0xff]  ;;  %v134_v38 = vstv %s938_s3 }
   0xd   :  { %s540_s0 = sld [smem:[#allocation3 + $0x1]]  ;;  %v632_v29 = vld [vmem:[%s939_s4 + $0x20] sm:$0xff] }
   0xe   :  { %s542_s30 = sld [smem:[#allocation3 + $0x2]] }
   0xf   :  { %s544_s6 = sld [smem:[#allocation3 + $0x3]] }
  0x10   :  { %s546_s7 = sld [smem:[#allocation3 + $0x4]] }
  0x11   :  { %s548_s8 = sld [smem:[#allocation3 + $0x5]] }
  0x12   :  { %s550_s2 = sld [smem:[#allocation3 + $0x6]]  ;;  %v135_v2 = vstv %s538_s1 }
  0x13   :  { %s552_s9 = sld [smem:[#allocation3 + $0x7]]  ;;  %v159_v3 = vstv %s540_s0  ;;  %v136_v12 = vmul.f32 %v135_v2, %v577_v0 }
  0x14   :  { %s554_s10 = sld [smem:[#allocation3 + $0x8]]  ;;  %v183_v6 = vstv %s542_s30  ;;  %v160_v13 = vmul.f32 %v159_v3, %v577_v0 }
  0x15   :  { %s556_s11 = sld [smem:[#allocation3 + $0x9]]  ;;  %v207_v8 = vstv %s544_s6  ;;  %v184_v18 = vmul.f32 %v183_v6, %v577_v0 }
  0x16   :  { %s399_s12 = sld [smem:[#allocation3 + $0x80]]  ;;  %v231_v10 = vstv %s546_s7  ;;  %v208_v20 = vmul.f32 %v207_v8, %v577_v0 }
  0x17   :  { %s400_s13 = sld [smem:[#allocation3 + $0x81]]  ;;  %v255_v14 = vstv %s548_s8  ;;  %v232_v22 = vmul.f32 %v231_v10, %v577_v0 }
  0x18   :  { %s558_s14 = sld [smem:[#allocation3 + $0x82]]  ;;  %v256_v24 = vmul.f32 %v255_v14, %v577_v0  ;;  %v279_v26 = vstv %s550_s2 }
  0x19   :  { %s560_s15 = sld [smem:[#allocation3 + $0x83]]  ;;  %v280_v32 = vmul.f32 %v279_v26, %v577_v0  ;;  %v303_v45 = vstv %s552_s9 }
  0x1a   :  { %s562_s16 = sld [smem:[#allocation3 + $0x84]]  ;;  %v304_v55 = vmul.f32 %v303_v45, %v577_v0  ;;  %v327_v57 = vstv %s554_s10 }
  0x1b   :  { %s564_s17 = sld [smem:[#allocation3 + $0x85]]  ;;  %v351_v3 = vstv %s556_s11  ;;  %v328_v8 = vmul.f32 %v327_v57, %v577_v0 }
  0x1c   :  { %s566_s18 = sld [smem:[#allocation3 + $0x86]]  ;;  %v137_v4 = vstv %s399_s12 }
  0x1d   :  { %s568_s19 = sld [smem:[#allocation3 + $0x87]]  ;;  %v161_v5 = vstv %s400_s13  ;;  %v138_v16 = vmul.f32 %v582_v1, %v137_v4  ;;  %v449_v4 = vld [vmem:[%s939_s4 + $0x18] sm:$0xff] }
  0x1e   :  { %s570_s20 = sld [smem:[#allocation3 + $0x88]]  ;;  %v185_v7 = vstv %s558_s14  ;;  %v162_v17 = vmul.f32 %v582_v1, %v161_v5  ;;  %v725_v5 = vld [vmem:[%s939_s4 + $0x28] sm:$0xff] }
  0x1f   :  { %s572_s21 = sld [smem:[#allocation3 + $0x89]]  ;;  %v209_v9 = vstv %s560_s15  ;;  %v186_v19 = vmul.f32 %v582_v1, %v185_v7  ;;  %v634_v30 = vadd.f32 %v138_v16, %v136_v12 }
  0x20   :  { %s586_s26 = sld [smem:[#allocation3 + $0x100]]  ;;  %v233_v11 = vstv %s562_s16  ;;  %v210_v21 = vmul.f32 %v582_v1, %v209_v9  ;;  %v641_v34 = vadd.f32 %v162_v17, %v160_v13  ;;  %v352_v17 = vmul.f32 %v351_v3, %v577_v0 }
  0x21   :  { %s590_s27 = sld [smem:[#allocation3 + $0x101]]  ;;  %v257_v15 = vstv %s564_s17  ;;  %v234_v23 = vmul.f32 %v582_v1, %v233_v11  ;;  %v644_v36 = vadd.f32 %v186_v19, %v184_v18 }
  0x22   :  { %s596_s28 = sld [smem:[#allocation3 + $0x102]]  ;;  %v258_v25 = vmul.f32 %v582_v1, %v257_v15  ;;  %v281_v27 = vstv %s566_s18  ;;  %v646_v37 = vadd.f32 %v210_v21, %v208_v20 }
  0x23   :  { %s602_s29 = sld [smem:[#allocation3 + $0x103]]  ;;  %v282_v33 = vmul.f32 %v582_v1, %v281_v27  ;;  %v654_v40 = vadd.f32 %v234_v23, %v232_v22  ;;  %v305_v53 = vstv %s568_s19 }
  0x24   :  { %s608_s1 = sld [smem:[#allocation3 + $0x104]]  ;;  %v656_v41 = vadd.f32 %v258_v25, %v256_v24  ;;  %v306_v56 = vmul.f32 %v582_v1, %v305_v53  ;;  %v329_v61 = vstv %s570_s20 }
  0x25   :  { %s614_s0 = sld [smem:[#allocation3 + $0x105]]  ;;  %v677_v49 = vadd.f32 %v282_v33, %v280_v32  ;;  %v330_v9 = vmul.f32 %v582_v1, %v329_v61 }
  0x26   :  { %s620_s30 = sld [smem:[#allocation3 + $0x106]]  ;;  %v142_v31 = vstv %s586_s26  ;;  %v742_v13 = vadd.f32 %v306_v56, %v304_v55 }
  0x27   :  { %s622_s6 = sld [smem:[#allocation3 + $0x107]]  ;;  %v166_v35 = vstv %s590_s27  ;;  %v661_v42 = vmul.f32 %v627_v28, %v142_v31  ;;  %v664_v43 = vmul.f32 %v632_v29, %v142_v31  ;;  %v763_v25 = vadd.f32 %v330_v9, %v328_v8 }
  0x28   :  { %s639_s2 = sld [smem:[#allocation3 + $0x108]]  ;;  %v190_v39 = vstv %s596_s28  ;;  %v671_v46 = vmul.f32 %v627_v28, %v166_v35  ;;  %v674_v47 = vmul.f32 %v632_v29, %v166_v35  ;;  %v353_v31 = vstv %s572_s21 }
  0x29   :  { %s648_s14 = sld [smem:[#allocation3 + $0x109]]  ;;  %v214_v44 = vstv %s602_s29  ;;  %v682_v50 = vmul.f32 %v627_v28, %v190_v39  ;;  %v685_v51 = vmul.f32 %v632_v29, %v190_v39  ;;  %v354_v39 = vmul.f32 %v582_v1, %v353_v31 }
  0x2a   :  { %s658_s17 = sld [smem:[#allocation3 + $0x180]]  ;;  %v238_v48 = vstv %s608_s1  ;;  %v692_v54 = vmul.f32 %v627_v28, %v214_v44  ;;  %v700_v58 = vmul.f32 %v632_v29, %v214_v44 }
  0x2b   :  { %s668_s18 = sld [smem:[#allocation3 + $0x181]]  ;;  %v262_v52 = vstv %s614_s0  ;;  %v703_v59 = vmul.f32 %v627_v28, %v238_v48  ;;  %v710_v62 = vmul.f32 %v632_v29, %v238_v48  ;;  %v810_v9 = vadd.f32 %v354_v39, %v352_v17 }
  0x2c   :  { %s679_s22 = sld [smem:[#allocation3 + $0x182]]  ;;  %v286_v60 = vstv %s620_s30  ;;  %v713_v63 = vmul.f32 %v627_v28, %v262_v52  ;;  %v729_v7 = vmul.f32 %v632_v29, %v262_v52 }
  0x2d   :  { %s689_s9 = sld [smem:[#allocation3 + $0x183]]  ;;  %v310_v2 = vstv %s622_s6  ;;  %v737_v11 = vmul.f32 %v627_v28, %v286_v60  ;;  %v740_v12 = vmul.f32 %v632_v29, %v286_v60 }
  0x2e   :  { %s697_s23 = sld [smem:[#allocation3 + $0x184]]  ;;  %v748_v15 = vmul.f32 %v627_v28, %v310_v2  ;;  %v751_v16 = vmul.f32 %v632_v29, %v310_v2  ;;  %v334_v21 = vstv %s639_s2 }
  0x2f   :  { %s707_s19 = sld [smem:[#allocation3 + $0x185]]  ;;  %v774_v35 = vmul.f32 %v627_v28, %v334_v21  ;;  %v784_v52 = vmul.f32 %v632_v29, %v334_v21  ;;  %v358_v61 = vstv %s648_s14 }
  0x30   :  { %s717_s10 = sld [smem:[#allocation3 + $0x186]]  ;;  %v145_v6 = vstv %s658_s17  ;;  %v826_v31 = vmul.f32 %v627_v28, %v358_v61 }
  0x31   :  { %s733_s11 = sld [smem:[#allocation3 + $0x187]]  ;;  %v169_v10 = vstv %s668_s18  ;;  %v146_v18 = vmul.f32 %v449_v4, %v145_v6  ;;  %v151_v19 = vmul.f32 %v725_v5, %v145_v6 }
  0x32   :  { %s744_s4 = sld [smem:[#allocation3 + $0x188]]  ;;  %v193_v14 = vstv %s679_s22  ;;  %v170_v22 = vmul.f32 %v449_v4, %v169_v10  ;;  %v175_v23 = vmul.f32 %v725_v5, %v169_v10 }
  0x33   :  { %s754_s20 = sld [smem:[#allocation3 + $0x189]]  ;;  %v217_v20 = vstv %s689_s9  ;;  %v194_v0 = vmul.f32 %v449_v4, %v193_v14  ;;  %v199_v26 = vmul.f32 %v725_v5, %v193_v14 }
  0x34   :  { %s759_s28 = sld [smem:[#allocation5]]  ;;  %v241_v24 = vstv %s697_s23  ;;  %v218_v32 = vmul.f32 %v449_v4, %v217_v20  ;;  %v223_v44 = vmul.f32 %v725_v5, %v217_v20 }
  0x35   :  { %s765_s29 = sld [smem:[#allocation5 + $0x1]]  ;;  %v265_v27 = vstv %s707_s19  ;;  %v780_v45 = vmul.f32 %v449_v4, %v241_v24  ;;  %v789_v53 = vmul.f32 %v725_v5, %v241_v24 }
  0x36   :  { %s770_s1 = sld [smem:[#allocation5 + $0x2]]  ;;  %v289_v33 = vstv %s717_s10  ;;  %v791_v55 = vmul.f32 %v449_v4, %v265_v27  ;;  %v794_v1 = vmul.f32 %v725_v5, %v265_v27 }
  0x37   :  { %s777_s0 = sld [smem:[#allocation5 + $0x3]]  ;;  %v313_v48 = vstv %s733_s11  ;;  %v797_v57 = vmul.f32 %v449_v4, %v289_v33  ;;  %v800_v60 = vmul.f32 %v725_v5, %v289_v33 }
  0x38   :  { %s786_s21 = sld [smem:[#allocation5 + $0x4]]  ;;  %v337_v56 = vstv %s744_s4  ;;  %v805_v6 = vmul.f32 %v449_v4, %v313_v48  ;;  %v808_v8 = vmul.f32 %v725_v5, %v313_v48 }
  0x39   :  { %v361_v2 = vstv %s754_s20  ;;  %s812_s30 = sld [smem:[#allocation5 + $0x5]]  ;;  %v816_v20 = vmul.f32 %v449_v4, %v337_v56  ;;  %v819_v21 = vmul.f32 %v725_v5, %v337_v56 }
  0x3a   :  { %v140_v3 = vstv %s759_s28  ;;  %v830_v17 = vmul.f32 %v449_v4, %v361_v2  ;;  %s836_s6 = sld [smem:[#allocation7]] }
  0x3b   :  { %v141_v10 = vadd.f32 %v140_v3, %v634_v30  ;;  %v164_v14 = vstv %s765_s29  ;;  %s842_s7 = sld [smem:[#allocation7 + $0x1]] }
  0x3c   :  { %v165_v24 = vadd.f32 %v164_v14, %v641_v34  ;;  %v188_v27 = vstv %s770_s1  ;;  %s846_s8 = sld [smem:[#allocation7 + $0x2]] }
  0x3d   :  { %v144_v33 = vadd.f32 %v661_v42, %v141_v10  ;;  %v150_v30 = vadd.f32 %v664_v43, %v141_v10  ;;  %v189_v39 = vadd.f32 %v188_v27, %v644_v36  ;;  %v212_v48 = vstv %s777_s0  ;;  %s850_s12 = sld [smem:[#allocation7 + $0x3]] }
  0x3e   :  { %v168_v56 = vadd.f32 %v671_v46, %v165_v24  ;;  %v174_v34 = vadd.f32 %v674_v47, %v165_v24  ;;  %v213_v3 = vadd.f32 %v212_v48, %v646_v37  ;;  %v236_v28 = vstv %s786_s21  ;;  %s852_s13 = sld [smem:[#allocation7 + $0x4]] }
  0x3f   :  { %v147_v4 = vadd.f32 %v146_v18, %v144_v33  ;;  %v152_v14 = vadd.f32 %v151_v19, %v150_v30  ;;  %v192_v42 = vadd.f32 %v682_v50, %v189_v39  ;;  %v198_v43 = vadd.f32 %v685_v51, %v189_v39  ;;  %s854_s2 = sld [smem:[#allocation5 + $0x6]] }
  0x40   :  { %v171_v36 = vadd.f32 %v170_v22, %v168_v56  ;;  %v176_v10 = vadd.f32 %v175_v23, %v174_v34  ;;  %v216_v27 = vadd.f32 %v692_v54, %v213_v3  ;;  %v222_v46 = vadd.f32 %v700_v58, %v213_v3  ;;  %s860_s15 = sld [smem:[#allocation7 + $0x5]] }
  0x41   :  { %v148_v37 = vmax.f32 %v147_v4, 0.0  ;;  %v153_v47 = vmax.f32 %v152_v14, 0.0  ;;  %v195_v18 = vadd.f32 %v194_v0, %v192_v42  ;;  %v200_v19 = vadd.f32 %v199_v26, %v198_v43  ;;  %s864_s16 = sld [smem:[#allocation5 + $0x7]] }
  0x42   :  { %v172_v50 = vmax.f32 %v171_v36, 0.0  ;;  %v177_v51 = vmax.f32 %v176_v10, 0.0  ;;  %v219_v24 = vadd.f32 %v218_v32, %v216_v27  ;;  %v224_v22 = vadd.f32 %v223_v44, %v222_v46  ;;  %s876_s23 = sld [smem:[#allocation5 + $0x8]] }
  0x43   :  { %v196_v54 = vmax.f32 %v195_v18, 0.0  ;;  %v201_v23 = vmax.f32 %v200_v19, 0.0  ;;  %v237_v58 = vadd.f32 %v236_v28, %v654_v40  ;;  %v260_v33 = vstv %s812_s30  ;;  %s882_s19 = sld [smem:[#allocation7 + $0x6]] }
  0x44   :  { %v154_v30 = vstv %s836_s6  ;;  %v220_v39 = vmax.f32 %v219_v24, 0.0  ;;  %v225_v48 = vmax.f32 %v224_v22, 0.0  ;;  %v261_v0 = vadd.f32 %v260_v33, %v656_v41  ;;  %s886_s3 = sld [smem:[#allocation5 + $0x9]] }
  0x45   :  { %v155_v26 = vmul.f32 %v154_v30, %v148_v37  ;;  %v157_v56 = vmul.f32 %v154_v30, %v153_v47  ;;  %v178_v32 = vstv %s842_s7  ;;  %v240_v44 = vadd.f32 %v703_v59, %v237_v58  ;;  %s892_s10 = sld [smem:[#allocation7 + $0x7]] }
  0x46   :  { %v179_v34 = vmul.f32 %v178_v32, %v172_v50  ;;  %v181_v3 = vmul.f32 %v178_v32, %v177_v51  ;;  %v202_v40 = vstv %s846_s8  ;;  %v246_v28 = vadd.f32 %v710_v62, %v237_v58  ;;  %s898_s24 = sld [smem:[#allocation7 + $0x8]] }
  0x47   :  { %v156_v41 = vadd.f32 %v155_v26, %v134_v38  ;;  %v158_v4 = vadd.f32 %v157_v56, %v134_v38  ;;  %v203_v14 = vmul.f32 %v202_v40, %v196_v54  ;;  %v205_v42 = vmul.f32 %v202_v40, %v201_v23  ;;  %s914_s14 = sld [smem:[#allocation7 + $0x9]] }
  0x48   :  { %v226_v59 = vstv %s850_s12  ;;  %v243_v43 = vadd.f32 %v780_v45, %v240_v44  ;;  %v248_v62 = vadd.f32 %v789_v53, %v246_v28  ;;  %v250_v36 = vstv %s852_s13 }
  0x49   :  { %v180_v10 = vadd.f32 %v179_v34, %v156_v41  ;;  %v182_v27 = vadd.f32 %v181_v3, %v158_v4  ;;  %v227_v46 = vmul.f32 %v226_v59, %v220_v39  ;;  %v229_v37 = vmul.f32 %v226_v59, %v225_v48 }
  0x4a   :  { %v244_v47 = vmax.f32 %v243_v43, 0.0  ;;  %v249_v38 = vmax.f32 %v248_v62, 0.0  ;;  %v264_v18 = vadd.f32 %v713_v63, %v261_v0  ;;  %v270_v19 = vadd.f32 %v729_v7, %v261_v0 }
  0x4b   :  { %v204_v45 = vadd.f32 %v203_v14, %v180_v10  ;;  %v206_v50 = vadd.f32 %v205_v42, %v182_v27  ;;  %v284_v53 = vstv %s854_s2  ;;  %v365_v51 = vmul.f32 %v632_v29, %v358_v61 }
  0x4c   :  { %v251_v24 = vmul.f32 %v250_v36, %v244_v47  ;;  %v253_v22 = vmul.f32 %v250_v36, %v249_v38  ;;  %v267_v54 = vadd.f32 %v791_v55, %v264_v18  ;;  %v272_v63 = vadd.f32 %v794_v1, %v270_v19 }
  0x4d   :  { %v228_v23 = vadd.f32 %v227_v46, %v204_v45  ;;  %v230_v7 = vadd.f32 %v229_v37, %v206_v50  ;;  %v274_v58 = vstv %s860_s15  ;;  %v285_v33 = vadd.f32 %v284_v53, %v677_v49 }
  0x4e   :  { %v268_v30 = vmax.f32 %v267_v54, 0.0  ;;  %v273_v39 = vmax.f32 %v272_v63, 0.0  ;;  %v308_v29 = vstv %s864_s16  ;;  %v367_v61 = vmul.f32 %v725_v5, %v361_v2 }
  0x4f   :  { %v252_v48 = vadd.f32 %v251_v24, %v228_v23  ;;  %v254_v0 = vadd.f32 %v253_v22, %v230_v7  ;;  %v288_v55 = vadd.f32 %v737_v11, %v285_v33  ;;  %v294_v1 = vadd.f32 %v740_v12, %v285_v33 }
  0x50   :  { %v275_v26 = vmul.f32 %v274_v58, %v268_v30  ;;  %v277_v56 = vmul.f32 %v274_v58, %v273_v39  ;;  %v309_v32 = vadd.f32 %v308_v29, %v742_v13  ;;  %v332_v49 = vstv %s876_s23 }
  0x51   :  { %v291_v44 = vadd.f32 %v797_v57, %v288_v55  ;;  %v296_v34 = vadd.f32 %v800_v60, %v294_v1  ;;  %v298_v3 = vstv %s882_s19  ;;  %v333_v5 = vadd.f32 %v332_v49, %v763_v25 }
  0x52   :  { %v276_v2 = vadd.f32 %v275_v26, %v252_v48  ;;  %v278_v40 = vadd.f32 %v277_v56, %v254_v0  ;;  %v312_v11 = vadd.f32 %v748_v15, %v309_v32  ;;  %v318_v12 = vadd.f32 %v751_v16, %v309_v32 }
  0x53   :  { %v292_v13 = vmax.f32 %v291_v44, 0.0  ;;  %v297_v28 = vmax.f32 %v296_v34, 0.0  ;;  %v336_v41 = vadd.f32 %v774_v35, %v333_v5  ;;  %v342_v57 = vadd.f32 %v784_v52, %v333_v5 }
  0x54   :  { %v315_v60 = vadd.f32 %v805_v6, %v312_v11  ;;  %v320_v4 = vadd.f32 %v808_v8, %v318_v12  ;;  %v322_v25 = vstv %s892_s10  ;;  %v356_v14 = vstv %s886_s3 }
  0x55   :  { %v299_v42 = vmul.f32 %v298_v3, %v292_v13  ;;  %v301_v59 = vmul.f32 %v298_v3, %v297_v28  ;;  %v339_v15 = vadd.f32 %v816_v20, %v336_v41  ;;  %v344_v16 = vadd.f32 %v819_v21, %v342_v57 }
  0x56   :  { %v316_v43 = vmax.f32 %v315_v60, 0.0  ;;  %v321_v62 = vmax.f32 %v320_v4, 0.0  ;;  %v346_v36 = vstv %s898_s24  ;;  %v357_v35 = vadd.f32 %v356_v14, %v810_v9 }
  0x57   :  { %v300_v10 = vadd.f32 %v299_v42, %v276_v2  ;;  %v302_v52 = vadd.f32 %v301_v59, %v278_v40  ;;  %v340_v27 = vmax.f32 %v339_v15, 0.0  ;;  %v345_v6 = vmax.f32 %v344_v16, 0.0 }
  0x58   :  { %v323_v46 = vmul.f32 %v322_v25, %v316_v43  ;;  %v325_v8 = vmul.f32 %v322_v25, %v321_v62  ;;  %v360_v37 = vadd.f32 %v826_v31, %v357_v35  ;;  %v366_v47 = vadd.f32 %v365_v51, %v357_v35 }
  0x59   :  { %v347_v38 = vmul.f32 %v346_v36, %v340_v27  ;;  %v349_v18 = vmul.f32 %v346_v36, %v345_v6  ;;  %v370_v50 = vstv %s914_s14 }
  0x5a   :  { %v324_v20 = vadd.f32 %v323_v46, %v300_v10  ;;  %v326_v19 = vadd.f32 %v325_v8, %v302_v52  ;;  %v363_v21 = vadd.f32 %v830_v17, %v360_v37  ;;  %v368_v45 = vadd.f32 %v367_v61, %v366_v47 }
  0x5c   :  { %v348_v53 = vadd.f32 %v347_v38, %v324_v20  ;;  %v350_v24 = vadd.f32 %v349_v18, %v326_v19  ;;  %v364_v9 = vmax.f32 %v363_v21, 0.0  ;;  %v369_v22 = vmax.f32 %v368_v45, 0.0 }
  0x5e   :  { %v371_v54 = vmul.f32 %v370_v50, %v364_v9  ;;  %v373_v63 = vmul.f32 %v370_v50, %v369_v22 }
  0x60   :  { %v372_v23 = vadd.f32 %v371_v54, %v348_v53  ;;  %v374_v7 = vadd.f32 %v373_v63, %v350_v24 }
  0x62   :  { %375 = vst [vmem:[%s940_s5] sm:$0xff] %v372_v23 }
  0x63   :  { %452 = vst [vmem:[%s940_s5 + $0x8] sm:$0xff] %v374_v7 }
  0x64   :  { %382 = vsyncpa [#allocation4], 1 }
  0x65   :  { %383 = vsyncpa [#allocation6], 1 }

</bundles_post_ra>
